<compile_context>
chip_gen: v7x
topology: tpu7x:2x2x1
jax: 0.10.0
libtpu: 0.0.40
codegen_flags: <defaults>
</compile_context>

<pallas_src>
import math

import jax
import jax.numpy as jnp
from jax.experimental import pallas as pl
from jax.experimental.pallas import tpu as pltpu


# ----------------------------- Pallas kernel --------------------------------


def _linear_matmul_kernel(x_ref, m_ref, o_ref):
    # x_ref: (tb, dim_in) VMEM tile -- contraction dim NOT lane-padded
    #        (Mosaic pads K inside vregs for free).
    # m_ref: (dim_in, dout_p) resident weight matrix.
    # o_ref: (tb, dout_p), dout_p % 128 == 0 -> lane-dense, unmasked stores.
    o_ref[...] = jnp.dot(
        x_ref[...], m_ref[...], preferred_element_type=jnp.float32
    ).astype(o_ref.dtype)


def _round_up(x, m):
    return (x + m - 1) // m * m


def pallas_linear(features, M_p, dim_out, *, tb=None, compute_dtype=None):
    """out[z, :dim_out] = features[z, :] @ M_p[:, :dim_out].

    features : (B, dim_in)       -- used as-is, no padding / extra HBM passes.
    M_p      : (dim_in, dout_p)  -- weights with output columns pre-padded to a
                                    multiple of 128 (done once at build time).
    """
    B, dim_in = features.shape
    assert M_p.shape[0] == dim_in
    dout_p = M_p.shape[1]
    assert dout_p % 128 == 0 and dim_out <= dout_p

    out_dtype = features.dtype
    if compute_dtype is not None:
        # Opt-in bf16 MXU feed; accumulation stays f32 inside the kernel.
        features = features.astype(compute_dtype)
        M_p = M_p.astype(compute_dtype)

    itemsize = jnp.dtype(features.dtype).itemsize
    m_itemsize = jnp.dtype(M_p.dtype).itemsize

    # Batch tile: one big tile (amortizes ~0.35 us per grid step), only capped
    # by a conservative VMEM budget for the double-buffered x/out tiles.  For
    # large B the grid naturally has many "parallel" steps that v7x's two
    # TensorCores can split; tiny batches (like the demo) run as a single step.
    if tb is None:
        budget = 8 * 1024 * 1024                       # x/out double-buffers
        per_row = 2 * (dim_in + dout_p) * itemsize     # 2 bufs each of x, out
        tb_cap = max(8, min(2048, (budget // per_row) // 8 * 8))
        tb = min(_round_up(B, 8), tb_cap)
    grid = (pl.cdiv(B, tb),)

    # Advisory cost from the TRUE (unpadded) dims.
    cost = pl.CostEstimate(
        flops=2 * B * dim_in * dim_out,
        transcendentals=0,
        bytes_accessed=(B * dim_in + dim_in * dim_out + B * dim_out) * itemsize,
    )

    def build(m_buffers):
        if m_buffers == 1:
            # Grid-invariant weight: single-buffer it (frees VMEM at real sizes).
            m_spec = pl.BlockSpec(
                (dim_in, dout_p), lambda i: (0, 0), pipeline_mode=pl.Buffered(1)
            )
        else:
            m_spec = pl.BlockSpec((dim_in, dout_p), lambda i: (0, 0))
        vmem_needed = (
            2 * tb * dim_in * itemsize
            + 2 * tb * dout_p * itemsize
            + m_buffers * dim_in * dout_p * m_itemsize
        )
        # Generous slack, but never the full 64 MiB (v7x physical VMEM).
        vmem_limit = int(
            min(48 * 1024 * 1024, max(16 * 1024 * 1024, 2 * vmem_needed))
        )
        return pl.pallas_call(
            _linear_matmul_kernel,
            out_shape=jax.ShapeDtypeStruct((B, dout_p), out_dtype),
            grid_spec=pltpu.PrefetchScalarGridSpec(
                num_scalar_prefetch=0,
                grid=grid,
                in_specs=[
                    pl.BlockSpec((tb, dim_in), lambda i: (i, 0)),
                    m_spec,
                ],
                out_specs=pl.BlockSpec((tb, dout_p), lambda i: (i, 0)),
            ),
            compiler_params=pltpu.CompilerParams(
                dimension_semantics=("parallel",),
                vmem_limit_bytes=vmem_limit,
            ),
            cost_estimate=cost,
        )

    # Called eagerly here so the fallback below can catch a lowering rejection
    # of Buffered(1) on older Mosaic versions.  (In production, wrap the chosen
    # variant in jax.jit so the trailing column slice fuses with neighbors.)
    try:
        out_p = build(1)(features, M_p)
    except Exception:
        out_p = build(2)(features, M_p)

    # Strip the lane padding of the output columns only (no batch padding used).
    return out_p[:, :dim_out]


# --------------------- parameter construction (plain JAX glue) ---------------


def irreps_dim(irreps):
    return sum(mul * (2 * l + 1) for mul, (l, p) in irreps)


def build_linear(key, irreps_in, irreps_out):
    """Init path weights and fold them into M_p [dim_in, round_up(dim_out,128)]."""
    dim_in = irreps_dim(irreps_in)
    dim_out = irreps_dim(irreps_out)
    dout_p = _round_up(dim_out, 128)

    off_in = [0]
    for mul, (l, p) in irreps_in:
        off_in.append(off_in[-1] + mul * (2 * l + 1))
    off_out = [0]
    for mul, (l, p) in irreps_out:
        off_out.append(off_out[-1] + mul * (2 * l + 1))

    # instructions: (i_in, 0, i_out, 'uvw', True, 1.0) for every matching (l, p)
    instr = [
        (i_in, i_out)
        for i_in, (mul_in, (l_in, p_in)) in enumerate(irreps_in)
        for i_out, (mul_out, (l_out, p_out)) in enumerate(irreps_out)
        if l_in == l_out and p_in == p_out
    ]

    n_paths_per_out = {}
    for _, i_out in instr:
        n_paths_per_out[i_out] = n_paths_per_out.get(i_out, 0) + 1

    # Build M directly with lane-padded output columns (done once, off the hot path).
    M_p = jnp.zeros((dim_in, dout_p), dtype=jnp.float32)
    paths = []  # kept for the pure-JAX reference check
    for i_in, i_out in instr:
        mul_in, (l, _p) = irreps_in[i_in]
        mul_out, _ = irreps_out[i_out]
        d = 2 * l + 1
        key, sub = jax.random.split(key)
        # torch.nn.Parameter(torch.randn((mul_in, 1, mul_out))) -> (mul_in, mul_out)
        W = jax.random.normal(sub, (mul_in, mul_out), dtype=jnp.float32)
        alpha = 1.0 / n_paths_per_out[i_out]          # out_var / sum(path vars), all == 1
        c = math.sqrt(alpha * 1.0 / (mul_in * 1))      # path_weight=1, mul_2=1
        # block[u*d + i, w*d + j] = c * W[u, w] * delta_ij
        block = c * jnp.einsum("uw,ij->uiwj", W, jnp.eye(d, dtype=jnp.float32))
        block = block.reshape(mul_in * d, mul_out * d)
        M_p = M_p.at[
            off_in[i_in] : off_in[i_in + 1], off_out[i_out] : off_out[i_out + 1]
        ].add(block)
        paths.append((i_in, i_out, W, c))

    return M_p, dim_out, paths, off_in, off_out


def reference_linear(x, irreps_in, irreps_out, paths, off_in, off_out):
    """Pure-JAX mirror of the generated torch einsum code (per-path einsums)."""
    B = x.shape[0]
    out = jnp.zeros((B, irreps_dim(irreps_out)), dtype=x.dtype)
    for i_in, i_out, W, c in paths:
        mul_in, (l, _p) = irreps_in[i_in]
        mul_out, _ = irreps_out[i_out]
        d = 2 * l + 1
        xb = x[:, off_in[i_in] : off_in[i_in + 1]].reshape(B, mul_in, d)
        yb = c * jnp.einsum("uw,zui->zwi", W, xb)       # 'uvw,zui,zv->zwi' with v==1
        out = out.at[:, off_out[i_out] : off_out[i_out + 1]].add(
            yb.reshape(B, mul_out * d)
        )
    return out


# ---------------------------------- main -------------------------------------


if __name__ == "__main__":
    # irreps_in  = 4x0e + 4x1o + 2x2e          -> dim 4 + 12 + 10 = 26
    # irreps_out = 8x0e + 4x1o + 3x2e + 2x3o   -> dim 8 + 12 + 15 + 14 = 49
    # (2x3o has no matching input irrep -> that output block stays zero)
    irreps_in = [(4, (0, 1)), (4, (1, -1)), (2, (2, 1))]
    irreps_out = [(8, (0, 1)), (4, (1, -1)), (3, (2, 1)), (2, (3, -1))]

    key = jax.random.PRNGKey(0)
    k_w, k_x = jax.random.split(key)

    M_p, dim_out, paths, off_in, off_out = build_linear(k_w, irreps_in, irreps_out)

    batch = 16
    features = jax.random.normal(
        k_x, (batch, irreps_dim(irreps_in)), dtype=jnp.float32
    )

    out = pallas_linear(features, M_p, dim_out)   # tb auto -> 16, grid=(1,)
    out = jax.block_until_ready(out)

    ref = reference_linear(features, irreps_in, irreps_out, paths, off_in, off_out)
    assert out.shape == (batch, dim_out)
    assert jnp.allclose(out, ref, atol=1e-4, rtol=1e-4), float(
        jnp.max(jnp.abs(out - ref))
    )
    print("KERNEL_OK")
</pallas_src>

<mosaic_0001>
module attributes {stable_mosaic.version = 11 : i64} {
  func.func @_linear_matmul_kernel(%arg0: i32, %arg1: memref<16x26xf32, #tpu.memory_space<vmem>>, %arg2: memref<26x128xf32, #tpu.memory_space<vmem>>, %arg3: memref<16x128xf32, #tpu.memory_space<vmem>>) attributes {dimension_semantics = [#tpu.dimension_semantics<parallel>], iteration_bounds = array<i64: 1>, scalar_prefetch = 0 : i64, scratch_operands = 0 : i64, tpu.core_type = #tpu.core_type<tc>, window_params = [{transform_indices = @transform_0, window_bounds = array<i64: 16, 26>}, {pipeline_mode = #tpu.pipeline_mode<synchronous>, transform_indices = @transform_1, window_bounds = array<i64: 26, 128>}, {transform_indices = @transform_2, window_bounds = array<i64: 16, 128>}]} {
    %c0 = arith.constant 0 : index
    %c0_0 = arith.constant 0 : index
    %0 = vector.load %arg1[%c0, %c0_0] : memref<16x26xf32, #tpu.memory_space<vmem>>, vector<16x26xf32>
    %c0_1 = arith.constant 0 : index
    %c0_2 = arith.constant 0 : index
    %1 = vector.load %arg2[%c0_1, %c0_2] : memref<26x128xf32, #tpu.memory_space<vmem>>, vector<26x128xf32>
    %cst = arith.constant dense<0.000000e+00> : vector<16x128xf32>
    %2 = tpu.matmul %0, %1, %cst {dimension_numbers = #tpu.dot_dimension_numbers<[1], [0], [0], [1], [0, 0, 1, 1], [], []>} : vector<16x26xf32>, vector<26x128xf32>, vector<16x128xf32> -> vector<16x128xf32>
    %c0_3 = arith.constant 0 : index
    %c0_4 = arith.constant 0 : index
    %3 = vector.load %arg3[%c0_3, %c0_4] : memref<16x128xf32, #tpu.memory_space<vmem>>, vector<16x128xf32>
    tpu.vector_store %arg3[%c0_3, %c0_4], %2 {strides = array<i32>} : memref<16x128xf32, #tpu.memory_space<vmem>>, vector<16x128xf32>,
    return
  }
  func.func @transform_0(%arg0: i32) -> (i32, i32) {
    %c0_i32 = arith.constant 0 : i32
    %c0_i32_0 = arith.constant 0 : i32
    return %arg0, %c0_i32 : i32, i32
  }
  func.func @transform_1(%arg0: i32) -> (i32, i32) {
    %c0_i32 = arith.constant 0 : i32
    %c0_i32_0 = arith.constant 0 : i32
    %c0_i32_1 = arith.constant 0 : i32
    return %c0_i32, %c0_i32_0 : i32, i32
  }
  func.func @transform_2(%arg0: i32) -> (i32, i32) {
    %c0_i32 = arith.constant 0 : i32
    %c0_i32_0 = arith.constant 0 : i32
    return %arg0, %c0_i32 : i32, i32
  }
}

module attributes {stable_mosaic.version = 11 : i64} {
  func.func @_linear_matmul_kernel(%arg0: i32, %arg1: memref<16x26xf32, #tpu.memory_space<vmem>>, %arg2: memref<26x128xf32, #tpu.memory_space<vmem>>, %arg3: memref<16x128xf32, #tpu.memory_space<vmem>>) attributes {dimension_semantics = [#tpu.dimension_semantics<parallel>], iteration_bounds = array<i64: 1>, scalar_prefetch = 0 : i64, scratch_operands = 0 : i64, tpu.core_type = #tpu.core_type<tc>, window_params = [{transform_indices = @transform_0, window_bounds = array<i64: 16, 26>}, {pipeline_mode = #tpu.pipeline_mode<synchronous>, transform_indices = @transform_1, window_bounds = array<i64: 26, 128>}, {transform_indices = @transform_2, window_bounds = array<i64: 16, 128>}]} {
    %c0 = arith.constant 0 : index
    %c0_0 = arith.constant 0 : index
    %0 = vector.load %arg1[%c0, %c0_0] : memref<16x26xf32, #tpu.memory_space<vmem>>, vector<16x26xf32>
    %c0_1 = arith.constant 0 : index
    %c0_2 = arith.constant 0 : index
    %1 = vector.load %arg2[%c0_1, %c0_2] : memref<26x128xf32, #tpu.memory_space<vmem>>, vector<26x128xf32>
    %cst = arith.constant dense<0.000000e+00> : vector<16x128xf32>
    %2 = tpu.matmul %0, %1, %cst {dimension_numbers = #tpu.dot_dimension_numbers<[1], [0], [0], [1], [0, 0, 1, 1], [], []>} : vector<16x26xf32>, vector<26x128xf32>, vector<16x128xf32> -> vector<16x128xf32>
    %c0_3 = arith.constant 0 : index
    %c0_4 = arith.constant 0 : index
    %3 = vector.load %arg3[%c0_3, %c0_4] : memref<16x128xf32, #tpu.memory_space<vmem>>, vector<16x128xf32>
    tpu.vector_store %arg3[%c0_3, %c0_4], %2 {strides = array<i32>} : memref<16x128xf32, #tpu.memory_space<vmem>>, vector<16x128xf32>,
    return
  }
  func.func @transform_0(%arg0: i32) -> (i32, i32) {
    %c0_i32 = arith.constant 0 : i32
    %c0_i32_0 = arith.constant 0 : i32
    return %arg0, %c0_i32 : i32, i32
  }
  func.func @transform_1(%arg0: i32) -> (i32, i32) {
    %c0_i32 = arith.constant 0 : i32
    %c0_i32_0 = arith.constant 0 : i32
    %c0_i32_1 = arith.constant 0 : i32
    return %c0_i32, %c0_i32_0 : i32, i32
  }
  func.func @transform_2(%arg0: i32) -> (i32, i32) {
    %c0_i32 = arith.constant 0 : i32
    %c0_i32_0 = arith.constant 0 : i32
    return %arg0, %c0_i32 : i32, i32
  }
}

</mosaic_0001>

<bundles_post_ra>
// kernel: tpu_custom_call.1
= control target key start
LH: loop header
LB: loop body
LE: loop exit
PB: predicated region body
PF: predicated region fallthrough
CT: control target
= control target key end

     0   :  { %7 = vsyncpa [#allocation3], 0  ;;  %s328_s0 = inlined_call_operand.hbm [shape: f32[16,26], index: 0, kind: input, shape index: {}]   ;;  %s329_s1 = inlined_call_operand.hbm [shape: f32[26,128], index: 1, kind: input, shape index: {}]   ;;  %s330_s2 = inlined_call_operand.hbm [shape: f32[16,128], index: 2, kind: output, shape index: {}]  }
   0x1   :  { %8 = vsyncpa [#allocation6], 0 }
   0x2   :  { %9 = vsyncpa [#allocation4], 0  ;;  %s260_s9 = smov [#allocation2]   ;;  %s188_s13 = scalar_lea.hbm %s328_s0, 256 }
   0x3   :  { %s15_s10 = sshll.u32 %s260_s9, 4  ;;  %p189_p0 = scmp.ne.s32.totalorder %s328_s0, %s188_s13  ;;  %s16_s10 = int_to_ptr.vmem [resolvable:$true] %s15_s10 }
   0x4   :  { %p192_p1 = scmp.lt.u32.totalorder %s188_s13, %s328_s0 }
   0x6   :  { %p194_p2 = pnand %p192_p1, %p189_p0 }
   0x8   :  { %197 = shalt.err (!%p194_p2)
}
   0x9   :  { %s198_s18 = scalar_lea.vmem %s16_s10, 256  ;;  %p203_p4 = scmp.lt.s32.totalorder %s16_s10, %s16_s10 }
   0xa   :  { %p199_p3 = scmp.ne.s32.totalorder %s16_s10, %s198_s18  ;;  %p204_p5 = scmp.lt.s32.totalorder %s198_s18, %s198_s18 }
   0xc   :  { %p205_p6 = por %p204_p5, %p203_p4 }
   0xe   :  { %p206_p7 = pnand %p205_p6, %p199_p3 }
  0x10   :  { %209 = shalt.err (!%p206_p7)
}
  0x11   :  { %s261_s19 = smov 128   ;;  %s262_s20 = smov 8  }
  0x12   :  { %21 = dma.hbm_to_vmem [thread:$0]  %s328_s0, 256, %s16_s10, [#allocation3], %s261_s19, %s261_s19, %s262_s20  }
  0x13   :  { %s263_s23 = smov [#allocation5]   ;;  %s210_s27 = scalar_lea.hbm %s329_s1, 512 }
  0x14   :  { %s27_s24 = sshll.u32 %s263_s23, 4  ;;  %p211_p8 = scmp.ne.s32.totalorder %s329_s1, %s210_s27  ;;  %s28_s24 = int_to_ptr.vmem [resolvable:$true] %s27_s24 }
  0x15   :  { %p214_p9 = scmp.lt.u32.totalorder %s210_s27, %s329_s1 }
  0x17   :  { %p216_p10 = pnand %p214_p9, %p211_p8 }
  0x19   :  { %219 = shalt.err (!%p216_p10)
}
  0x1a   :  { %s220_s4 = scalar_lea.vmem %s28_s24, 512  ;;  %p225_p12 = scmp.lt.s32.totalorder %s28_s24, %s28_s24 }
  0x1b   :  { %p221_p11 = scmp.ne.s32.totalorder %s28_s24, %s220_s4  ;;  %p226_p13 = scmp.lt.s32.totalorder %s220_s4, %s220_s4 }
  0x1d   :  { %p227_p0 = por %p226_p13, %p225_p12 }
  0x1f   :  { %p228_p1 = pnand %p227_p0, %p221_p11 }
  0x21   :  { %231 = shalt.err (!%p228_p1)
}
  0x22   :  { %33 = dma.hbm_to_vmem [thread:$0]  %s329_s1, 512, %s28_s24, [#allocation6], %s261_s19, %s261_s19, %s262_s20  }
  0x23   :  { %254 = dma.done.wait [#allocation3], 256  }
  0x24   :  { %255 = vsyncadd [#allocation3], 4294967040 }
  0x25   :  { %256 = dma.done.wait [#allocation6], 512  }
  0x26   :  { %257 = vsyncadd [#allocation6], 4294966784  ;;  %vm53_vm0 = vcmask 1041408   ;;  %vm46_vm1 = vcmask 211968   ;;  %v42_v0 = vld [vmem:[#allocation5] sm:$0xff]  ;;  %v43_v1 = vld [vmem:[#allocation5 + $0x8] sm:$0xff] }
  0x27   :  { %v44_v2 = vld [vmem:[#allocation5 + $0x10] sm:$0xff]  ;;  %v172_v3 = vpack.c.bf16 %v43_v1, %v42_v0  ;;  %v45_v4 = vld [vmem:[#allocation5 + $0x18] sm:$0x3]  ;;  %vm264_vm2 = vmmov 1   ;;  %s265_s1 = smov [#allocation7]  }
  0x28   :  { %v40_v5 = vld [vmem:[#allocation2] sm:$0xff]  ;;  %v176_v6 = vpack.c.bf16 %v45_v4, %v44_v2  ;;  %vm177_vm3 = vmpackc.low %vm53_vm0, %vm264_vm2  ;;  %v41_v7 = vld [vmem:[#allocation2 + $0x8] sm:$0xff]  ;;  %s139_s6 = sshll.u32 %s265_s1, 4  ;;  %s140_s6 = int_to_ptr.vmem [resolvable:$true] %s139_s6 }
  0x29   :  { %169 = vmatprep.mubr.msk.f32.mxu0 %vm46_vm1, %v40_v5  ;;  %173 = vmatprep.subr.bf16.mxu0 %v172_v3  ;;  %s232_s7 = scalar_lea.vmem %s140_s6, 256  ;;  %p237_p3 = scmp.lt.s32.totalorder %s140_s6, %s140_s6 }
  0x2a   :  { %175 = vmatpush3.bf16.msra.mxu0 %v172_v3  ;;  %p233_p2 = scmp.ne.s32.totalorder %s140_s6, %s232_s7  ;;  %p238_p4 = scmp.lt.s32.totalorder %s232_s7, %s232_s7 }
  0x2b   :  { %178 = vmatprep.subr.msk.bf16.mxu0 %vm177_vm3, %v176_v6 }
  0x2c   :  { %p239_p5 = por %p238_p4, %p237_p3 }
  0x2e   :  { %181 = vmatpush3.bf16.msk.msra.mxu0 %vm177_vm3, %v176_v6  ;;  %p240_p6 = pnand %p239_p5, %p233_p2 }
  0x31   :  { %170 = vmatmul.mubr.msk.f32.vlgmr.msra.gmra.mrb[0].mxu0 %vm46_vm1, %v41_v7 }
 0x104   :  { %v171_v8 = vpop.f32.mrb[0].mxu0 }
 0x105   :  { %133 = vst [vmem:[#allocation7 + $0x8] sm:$0xff] %v171_v8  ;;  %v123_v9 = vpop.f32.mrb[1].mxu0 }
 0x106   :  { %132 = vst [vmem:[#allocation7] sm:$0xff] %v123_v9 }
 0x107   :  { %243 = shalt.err (!%p240_p6)
}
 0x108   :  { %s244_s10 = scalar_lea.hbm %s330_s2, 256 }
 0x109   :  { %p245_p7 = scmp.ne.s32.totalorder %s330_s2, %s244_s10  ;;  %p248_p8 = scmp.lt.u32.totalorder %s244_s10, %s330_s2 }
 0x10b   :  { %p250_p9 = pnand %p248_p8, %p245_p7 }
 0x10d   :  { %253 = shalt.err (!%p250_p9)
}
 0x10e   :  { %145 = dma.vmem_to_hbm [thread:$0]  %s140_s6, 256, %s330_s2, [#allocation4], %s261_s19, %s261_s19, %s262_s20  }
 0x10f   :  { %258 = dma.done.wait [#allocation4], 256  }
 0x110   :  { %259 = vsyncadd [#allocation4], 4294967040 }
 0x111   :  { %149 = vsyncpa [#allocation3], 1 }
 0x112   :  { %150 = vsyncpa [#allocation6], 1 }
 0x113   :  { %151 = vsyncpa [#allocation4], 1 }

// kernel: tpu_custom_call.1
= control target key start
LH: loop header
LB: loop body
LE: loop exit
PB: predicated region body
PF: predicated region fallthrough
CT: control target
= control target key end

     0   :  { %7 = vsyncpa [#allocation3], 0  ;;  %s328_s0 = inlined_call_operand.hbm [shape: f32[16,26], index: 0, kind: input, shape index: {}]   ;;  %s329_s1 = inlined_call_operand.hbm [shape: f32[26,128], index: 1, kind: input, shape index: {}]   ;;  %s330_s2 = inlined_call_operand.hbm [shape: f32[16,128], index: 2, kind: output, shape index: {}]  }
   0x1   :  { %8 = vsyncpa [#allocation6], 0 }
   0x2   :  { %9 = vsyncpa [#allocation4], 0  ;;  %s260_s9 = smov [#allocation2]   ;;  %s188_s13 = scalar_lea.hbm %s328_s0, 256 }
   0x3   :  { %s15_s10 = sshll.u32 %s260_s9, 4  ;;  %p189_p0 = scmp.ne.s32.totalorder %s328_s0, %s188_s13  ;;  %s16_s10 = int_to_ptr.vmem [resolvable:$true] %s15_s10 }
   0x4   :  { %p192_p1 = scmp.lt.u32.totalorder %s188_s13, %s328_s0 }
   0x6   :  { %p194_p2 = pnand %p192_p1, %p189_p0 }
   0x8   :  { %197 = shalt.err (!%p194_p2)
}
   0x9   :  { %s198_s18 = scalar_lea.vmem %s16_s10, 256  ;;  %p203_p4 = scmp.lt.s32.totalorder %s16_s10, %s16_s10 }
   0xa   :  { %p199_p3 = scmp.ne.s32.totalorder %s16_s10, %s198_s18  ;;  %p204_p5 = scmp.lt.s32.totalorder %s198_s18, %s198_s18 }
   0xc   :  { %p205_p6 = por %p204_p5, %p203_p4 }
   0xe   :  { %p206_p7 = pnand %p205_p6, %p199_p3 }
  0x10   :  { %209 = shalt.err (!%p206_p7)
}
  0x11   :  { %s261_s19 = smov 128   ;;  %s262_s20 = smov 8  }
  0x12   :  { %21 = dma.hbm_to_vmem [thread:$0]  %s328_s0, 256, %s16_s10, [#allocation3], %s261_s19, %s261_s19, %s262_s20  }
  0x13   :  { %s263_s23 = smov [#allocation5]   ;;  %s210_s27 = scalar_lea.hbm %s329_s1, 512 }
  0x14   :  { %s27_s24 = sshll.u32 %s263_s23, 4  ;;  %p211_p8 = scmp.ne.s32.totalorder %s329_s1, %s210_s27  ;;  %s28_s24 = int_to_ptr.vmem [resolvable:$true] %s27_s24 }
  0x15   :  { %p214_p9 = scmp.lt.u32.totalorder %s210_s27, %s329_s1 }
  0x17   :  { %p216_p10 = pnand %p214_p9, %p211_p8 }
  0x19   :  { %219 = shalt.err (!%p216_p10)
}
  0x1a   :  { %s220_s4 = scalar_lea.vmem %s28_s24, 512  ;;  %p225_p12 = scmp.lt.s32.totalorder %s28_s24, %s28_s24 }
  0x1b   :  { %p221_p11 = scmp.ne.s32.totalorder %s28_s24, %s220_s4  ;;  %p226_p13 = scmp.lt.s32.totalorder %s220_s4, %s220_s4 }
  0x1d   :  { %p227_p0 = por %p226_p13, %p225_p12 }
  0x1f   :  { %p228_p1 = pnand %p227_p0, %p221_p11 }
  0x21   :  { %231 = shalt.err (!%p228_p1)
}
  0x22   :  { %33 = dma.hbm_to_vmem [thread:$0]  %s329_s1, 512, %s28_s24, [#allocation6], %s261_s19, %s261_s19, %s262_s20  }
  0x23   :  { %254 = dma.done.wait [#allocation3], 256  }
  0x24   :  { %255 = vsyncadd [#allocation3], 4294967040 }
  0x25   :  { %256 = dma.done.wait [#allocation6], 512  }
  0x26   :  { %257 = vsyncadd [#allocation6], 4294966784  ;;  %vm53_vm0 = vcmask 1041408   ;;  %vm46_vm1 = vcmask 211968   ;;  %v42_v0 = vld [vmem:[#allocation5] sm:$0xff]  ;;  %v43_v1 = vld [vmem:[#allocation5 + $0x8] sm:$0xff] }
  0x27   :  { %v44_v2 = vld [vmem:[#allocation5 + $0x10] sm:$0xff]  ;;  %v172_v3 = vpack.c.bf16 %v43_v1, %v42_v0  ;;  %v45_v4 = vld [vmem:[#allocation5 + $0x18] sm:$0x3]  ;;  %vm264_vm2 = vmmov 1   ;;  %s265_s1 = smov [#allocation7]  }
  0x28   :  { %v40_v5 = vld [vmem:[#allocation2] sm:$0xff]  ;;  %v176_v6 = vpack.c.bf16 %v45_v4, %v44_v2  ;;  %vm177_vm3 = vmpackc.low %vm53_vm0, %vm264_vm2  ;;  %v41_v7 = vld [vmem:[#allocation2 + $0x8] sm:$0xff]  ;;  %s139_s6 = sshll.u32 %s265_s1, 4  ;;  %s140_s6 = int_to_ptr.vmem [resolvable:$true] %s139_s6 }
  0x29   :  { %169 = vmatprep.mubr.msk.f32.mxu0 %vm46_vm1, %v40_v5  ;;  %173 = vmatprep.subr.bf16.mxu0 %v172_v3  ;;  %s232_s7 = scalar_lea.vmem %s140_s6, 256  ;;  %p237_p3 = scmp.lt.s32.totalorder %s140_s6, %s140_s6 }
  0x2a   :  { %175 = vmatpush3.bf16.msra.mxu0 %v172_v3  ;;  %p233_p2 = scmp.ne.s32.totalorder %s140_s6, %s232_s7  ;;  %p238_p4 = scmp.lt.s32.totalorder %s232_s7, %s232_s7 }
  0x2b   :  { %178 = vmatprep.subr.msk.bf16.mxu0 %vm177_vm3, %v176_v6 }
  0x2c   :  { %p239_p5 = por %p238_p4, %p237_p3 }
  0x2e   :  { %181 = vmatpush3.bf16.msk.msra.mxu0 %vm177_vm3, %v176_v6  ;;  %p240_p6 = pnand %p239_p5, %p233_p2 }
  0x31   :  { %170 = vmatmul.mubr.msk.f32.vlgmr.msra.gmra.mrb[0].mxu0 %vm46_vm1, %v41_v7 }
 0x104   :  { %v171_v8 = vpop.f32.mrb[0].mxu0 }
 0x105   :  { %133 = vst [vmem:[#allocation7 + $0x8] sm:$0xff] %v171_v8  ;;  %v123_v9 = vpop.f32.mrb[1].mxu0 }
 0x106   :  { %132 = vst [vmem:[#allocation7] sm:$0xff] %v123_v9 }
 0x107   :  { %243 = shalt.err (!%p240_p6)
}
 0x108   :  { %s244_s10 = scalar_lea.hbm %s330_s2, 256 }
 0x109   :  { %p245_p7 = scmp.ne.s32.totalorder %s330_s2, %s244_s10  ;;  %p248_p8 = scmp.lt.u32.totalorder %s244_s10, %s330_s2 }
 0x10b   :  { %p250_p9 = pnand %p248_p8, %p245_p7 }
 0x10d   :  { %253 = shalt.err (!%p250_p9)
}
 0x10e   :  { %145 = dma.vmem_to_hbm [thread:$0]  %s140_s6, 256, %s330_s2, [#allocation4], %s261_s19, %s261_s19, %s262_s20  }
 0x10f   :  { %258 = dma.done.wait [#allocation4], 256  }
 0x110   :  { %259 = vsyncadd [#allocation4], 4294967040 }
 0x111   :  { %149 = vsyncpa [#allocation3], 1 }
 0x112   :  { %150 = vsyncpa [#allocation6], 1 }
 0x113   :  { %151 = vsyncpa [#allocation4], 1 }

</bundles_post_ra>
